<compile_context>
chip_gen: v7x
topology: tpu7x:2x2x1
jax: 0.10.0
libtpu: 0.0.40
codegen_flags: <defaults>
</compile_context>

<pallas_src>
import functools
import math

import jax
import jax.numpy as jnp
from jax import lax
from jax.experimental import pallas as pl
from jax.experimental.pallas import tpu as pltpu

_INV_SQRT2 = 0.7071067811865476
_SQRT_2_OVER_PI = 0.7978845608028654


def _geglu_kernel(x_ref, wv_ref, wg_ref, bv_ref, bg_ref, o_ref, *, approximate):
    # x_ref:  (tm, dim_in)   streamed (changes every inner grid step)
    # wv_ref: (dim_in, tn)   value columns -- resident across the inner M sweep
    # wg_ref: (dim_in, tn)   gate  columns -- resident across the inner M sweep
    # bv_ref: (1, tn) f32    value bias    -- resident across the inner M sweep
    # bg_ref: (1, tn) f32    gate  bias    -- resident across the inner M sweep
    # o_ref:  (tm, tn)
    x = x_ref[...]
    h = jnp.dot(x, wv_ref[...], preferred_element_type=jnp.float32) + bv_ref[...]
    g = jnp.dot(x, wg_ref[...], preferred_element_type=jnp.float32) + bg_ref[...]
    if approximate:
        # tanh GELU: tanh goes to the EUP (separate bundle slot), keeping the
        # epilogue off the VALU once the kernel is MXU-bound (v6e/v7x).
        g3 = g * g * g
        gelu_g = 0.5 * g * (1.0 + jnp.tanh(_SQRT_2_OVER_PI * (g + 0.044715 * g3)))
    else:
        # Exact erf GELU: matches torch.nn.functional.gelu's default.
        gelu_g = 0.5 * g * (1.0 + lax.erf(g * _INV_SQRT2))
    o_ref[...] = (h * gelu_g).astype(o_ref.dtype)


def _pick_tn(dim_out):
    for cand in (512, 256, 128):
        if dim_out % cand == 0:
            return cand
    return dim_out  # small / unaligned dim_out: full width


def _physical_vmem_bytes():
    # v5e/v6e: 128 MiB, v7x: 64 MiB.  Query the chip; fall back to the
    # smallest (v7x) so we never request more than physical VMEM.
    try:
        return int(pltpu.get_tpu_info().vmem_capacity_bytes)
    except Exception:
        return 64 * 1024 * 1024


def _working_set_bytes(tm, tn, dim_in, x_isz, w_isz, out_isz):
    # Double-buffered per-step VMEM footprint: x tile, two weight tiles,
    # two bias tiles, output tile.
    return 2 * (tm * dim_in * x_isz
                + 2 * dim_in * tn * w_isz
                + 2 * tn * 4
                + tm * tn * out_isz)


def prepare_geglu_params(w, b, matmul_dtype=jnp.bfloat16):
    """Cast the fused projection weight/bias once at model load.

    Avoids a per-call HBM read+rewrite of the full (dim_in, 2*dim_out)
    weight inside geglu()."""
    return w.astype(matmul_dtype), b.astype(jnp.float32)


def geglu(x, w, b, *, tm=None, tn=None, matmul_dtype="auto",
          gelu_approximate=False):
    """GEGLU forward: proj = x @ w + b, split in half, value * gelu(gate).

    x: (..., dim_in)
    w: (dim_in, 2*dim_out)   (transpose of the torch Linear weight)
    b: (2*dim_out,)
    matmul_dtype: "auto" (default) -> bfloat16 MXU matmuls when x is f32,
                  else x.dtype; pass jnp.float32 for a strict f32 path.
                  Accumulation and the GELU/gating epilogue are always f32.
    returns (..., dim_out) in x.dtype
    """
    *lead, dim_in = x.shape
    two_dim_out = w.shape[1]
    dim_out = two_dim_out // 2
    out_dtype = x.dtype

    if matmul_dtype == "auto":
        matmul_dtype = jnp.bfloat16 if x.dtype == jnp.float32 else x.dtype
    matmul_dtype = jnp.dtype(matmul_dtype)

    M = math.prod(lead)
    x2 = x.reshape(M, dim_in)
    if x2.dtype != matmul_dtype:
        x2 = x2.astype(matmul_dtype)
    if w.dtype != matmul_dtype:
        # Prefer prepare_geglu_params() at model load; this per-call cast
        # rewrites the full weight in HBM every invocation.
        w = w.astype(matmul_dtype)
    b2 = b.reshape(1, two_dim_out).astype(jnp.float32)

    if tn is None:
        tn = _pick_tn(dim_out)
    if tm is None:
        tm = min(512, M)

    x_isz = jnp.dtype(x2.dtype).itemsize
    w_isz = jnp.dtype(w.dtype).itemsize
    out_isz = jnp.dtype(out_dtype).itemsize

    # Shrink tiles if the double-buffered working set would overflow the
    # chip's VMEM (wide dim_in / f32 weights on v7x's 64 MiB).
    phys_vmem = _physical_vmem_bytes()
    budget = int(0.55 * phys_vmem)
    while (_working_set_bytes(tm, tn, dim_in, x_isz, w_isz, out_isz) > budget
           and tn > 128 and tn % 256 == 0 and dim_out % (tn // 2) == 0):
        tn //= 2
    while (_working_set_bytes(tm, tn, dim_in, x_isz, w_isz, out_isz) > budget
           and tm > 128 and tm % 2 == 0):
        tm //= 2

    n_blocks = pl.cdiv(dim_out, tn)
    m_blocks = pl.cdiv(M, tm)
    # Outer axis: output-column tiles (weights resident); inner axis: rows.
    grid = (n_blocks, m_blocks)

    if tn % 128 == 0 and dim_out % tn == 0:
        # 128-aligned dim_out: no wrapper-side weight copies.  Pass the fused
        # weight/bias arrays twice; the gate half is addressed by block
        # offset.  Index maps depend only on the OUTER axis -> the weight and
        # bias tiles stay resident in VMEM across the inner M sweep.
        gate_off = dim_out // tn
        wv_arr, wg_arr = w, w
        bv_arr, bg_arr = b2, b2
        wv_map = lambda j, i: (0, j)
        wg_map = lambda j, i, off=gate_off: (0, j + off)
        bv_map = lambda j, i: (0, j)
        bg_map = lambda j, i, off=gate_off: (0, j + off)
    else:
        # Toy / unaligned dim_out: one-time split (tiny at these sizes).
        wv_arr, wg_arr = w[:, :dim_out], w[:, dim_out:]
        bv_arr, bg_arr = b2[:, :dim_out], b2[:, dim_out:]
        wv_map = wg_map = lambda j, i: (0, j)
        bv_map = bg_map = lambda j, i: (0, j)

    # HBM traffic under this grid order: weight + bias once, x re-streamed
    # once per output-column tile, output written once.
    cost = pl.CostEstimate(
        flops=2 * M * dim_in * two_dim_out,
        transcendentals=M * dim_out,  # erf / tanh
        bytes_accessed=(dim_in * two_dim_out * w_isz
                        + M * dim_in * x_isz * n_blocks
                        + two_dim_out * 4
                        + M * dim_out * out_isz),
    )

    ws = _working_set_bytes(tm, tn, dim_in, x_isz, w_isz, out_isz)
    vmem_limit = int(min(max(32 * 1024 * 1024, ws + (4 << 20)), phys_vmem))

    kernel = functools.partial(_geglu_kernel, approximate=gelu_approximate)

    out2 = pl.pallas_call(
        kernel,
        out_shape=jax.ShapeDtypeStruct((M, dim_out), out_dtype),
        grid_spec=pltpu.PrefetchScalarGridSpec(
            num_scalar_prefetch=0,
            grid=grid,
            in_specs=[
                pl.BlockSpec((tm, dim_in), lambda j, i: (i, 0)),  # streamed
                pl.BlockSpec((dim_in, tn), wv_map),               # resident
                pl.BlockSpec((dim_in, tn), wg_map),               # resident
                pl.BlockSpec((1, tn), bv_map),                    # resident
                pl.BlockSpec((1, tn), bg_map),                    # resident
            ],
            out_specs=pl.BlockSpec((tm, tn), lambda j, i: (i, j)),
        ),
        compiler_params=pltpu.CompilerParams(
            dimension_semantics=("parallel", "parallel"),
            vmem_limit_bytes=vmem_limit,
        ),
        cost_estimate=cost,
    )(x2, wv_arr, wg_arr, bv_arr, bg_arr)

    return out2.reshape(*lead, dim_out)


def geglu_ref(x, w, b, approximate=False):
    dim_out = w.shape[1] // 2
    proj = jnp.dot(x, w) + b
    h, g = proj[..., :dim_out], proj[..., dim_out:]
    return h * jax.nn.gelu(g, approximate=approximate)


if __name__ == "__main__":
    key = jax.random.PRNGKey(0)

    # --- Toy shape from the module spec (unaligned dim_out -> split path) ---
    batch, seq, dim_in, dim_out = 2, 8, 32, 32
    k1, k2, k3 = jax.random.split(key, 3)
    x = jax.random.normal(k1, (batch, seq, dim_in), dtype=jnp.float32)
    bound = 1.0 / math.sqrt(dim_in)
    w = jax.random.uniform(k2, (dim_in, 2 * dim_out), jnp.float32, -bound, bound)
    b = jax.random.uniform(k3, (2 * dim_out,), jnp.float32, -bound, bound)

    ref = geglu_ref(x, w, b)

    # Strict f32 MXU path.
    out_f32 = geglu(x, w, b, matmul_dtype=jnp.float32)
    jax.block_until_ready(out_f32)
    assert out_f32.shape == (batch, seq, dim_out)
    assert jnp.allclose(out_f32, ref, atol=1e-5, rtol=1e-5), (
        float(jnp.max(jnp.abs(out_f32 - ref))))

    # Default path: bf16 MXU matmuls (f32 accumulate + f32 epilogue);
    # weight pre-cast once (no per-call HBM rewrite of the fused weight).
    w_bf16, b_f32 = prepare_geglu_params(w, b)
    out_bf16 = geglu(x, w_bf16, b_f32)
    jax.block_until_ready(out_bf16)
    assert jnp.allclose(out_bf16, ref, atol=5e-2, rtol=5e-2), (
        float(jnp.max(jnp.abs(out_bf16 - ref))))

    # --- 128-aligned shape: dual-view fused weight (no HBM weight copies),
    #     weights resident across the inner row sweep, partial row tile. ---
    batch2, seq2, dim_in2, dim_out2 = 2, 160, 128, 1024
    k4, k5, k6 = jax.random.split(jax.random.PRNGKey(1), 3)
    xa = jax.random.normal(k4, (batch2, seq2, dim_in2), dtype=jnp.float32)
    bound2 = 1.0 / math.sqrt(dim_in2)
    wa = jax.random.uniform(k5, (dim_in2, 2 * dim_out2), jnp.float32, -bound2, bound2)
    ba = jax.random.uniform(k6, (2 * dim_out2,), jnp.float32, -bound2, bound2)

    refa = geglu_ref(xa, wa, ba)

    # Strict f32, explicit small tiles to exercise multi-block grid + partial
    # M tile + gate block offset.
    outa = geglu(xa, wa, ba, matmul_dtype=jnp.float32, tm=256, tn=256)
    jax.block_until_ready(outa)
    assert outa.shape == (batch2, seq2, dim_out2)
    assert jnp.allclose(outa, refa, atol=2e-4, rtol=2e-4), (
        float(jnp.max(jnp.abs(outa - refa))))

    # Default bf16 path with pre-cast weights.
    wa_bf16, ba_f32 = prepare_geglu_params(wa, ba)
    outa_bf = geglu(xa, wa_bf16, ba_f32)
    jax.block_until_ready(outa_bf)
    assert jnp.allclose(outa_bf, refa, atol=7e-2, rtol=7e-2), (
        float(jnp.max(jnp.abs(outa_bf - refa))))

    # EUP-friendly tanh-approximate GELU path (opt-in).
    refa_tanh = geglu_ref(xa, wa, ba, approximate=True)
    outa_tanh = geglu(xa, wa_bf16, ba_f32, gelu_approximate=True)
    jax.block_until_ready(outa_tanh)
    assert jnp.allclose(outa_tanh, refa_tanh, atol=7e-2, rtol=7e-2), (
        float(jnp.max(jnp.abs(outa_tanh - refa_tanh))))

    print("KERNEL_OK")
</pallas_src>

<mosaic_0001>
module attributes {stable_mosaic.version = 11 : i64} {
  func.func @_geglu_kernel(%arg0: i32, %arg1: i32, %arg2: memref<16x32xf32, #tpu.memory_space<vmem>>, %arg3: memref<32x32xf32, #tpu.memory_space<vmem>>, %arg4: memref<32x32xf32, #tpu.memory_space<vmem>>, %arg5: memref<1x32xf32, #tpu.memory_space<vmem>>, %arg6: memref<1x32xf32, #tpu.memory_space<vmem>>, %arg7: memref<16x32xf32, #tpu.memory_space<vmem>>) attributes {dimension_semantics = [#tpu.dimension_semantics<parallel>, #tpu.dimension_semantics<parallel>], iteration_bounds = array<i64: 1, 1>, scalar_prefetch = 0 : i64, scratch_operands = 0 : i64, tpu.core_type = #tpu.core_type<tc>, window_params = [{transform_indices = @transform_0, window_bounds = array<i64: 16, 32>}, {transform_indices = @transform_1, window_bounds = array<i64: 32, 32>}, {transform_indices = @transform_2, window_bounds = array<i64: 32, 32>}, {transform_indices = @transform_3, window_bounds = array<i64: 1, 32>}, {transform_indices = @transform_4, window_bounds = array<i64: 1, 32>}, {transform_indices = @transform_5, window_bounds = array<i64: 16, 32>}]} {
    %c0 = arith.constant 0 : index
    %c0_0 = arith.constant 0 : index
    %0 = vector.load %arg2[%c0, %c0_0] : memref<16x32xf32, #tpu.memory_space<vmem>>, vector<16x32xf32>
    %c0_1 = arith.constant 0 : index
    %c0_2 = arith.constant 0 : index
    %1 = vector.load %arg3[%c0_1, %c0_2] : memref<32x32xf32, #tpu.memory_space<vmem>>, vector<32x32xf32>
    %cst = arith.constant dense<0.000000e+00> : vector<16x32xf32>
    %2 = tpu.matmul %0, %1, %cst {dimension_numbers = #tpu.dot_dimension_numbers<[1], [0], [0], [1], [0, 0, 1, 1], [], []>} : vector<16x32xf32>, vector<32x32xf32>, vector<16x32xf32> -> vector<16x32xf32>
    %c0_3 = arith.constant 0 : index
    %c0_4 = arith.constant 0 : index
    %3 = vector.load %arg5[%c0_3, %c0_4] : memref<1x32xf32, #tpu.memory_space<vmem>>, vector<1x32xf32>
    %4 = vector.broadcast %3 : vector<1x32xf32> to vector<16x32xf32>
    %5 = arith.addf %2, %4 : vector<16x32xf32>
    %c0_5 = arith.constant 0 : index
    %c0_6 = arith.constant 0 : index
    %6 = vector.load %arg4[%c0_5, %c0_6] : memref<32x32xf32, #tpu.memory_space<vmem>>, vector<32x32xf32>
    %cst_7 = arith.constant dense<0.000000e+00> : vector<16x32xf32>
    %7 = tpu.matmul %0, %6, %cst_7 {dimension_numbers = #tpu.dot_dimension_numbers<[1], [0], [0], [1], [0, 0, 1, 1], [], []>} : vector<16x32xf32>, vector<32x32xf32>, vector<16x32xf32> -> vector<16x32xf32>
    %c0_8 = arith.constant 0 : index
    %c0_9 = arith.constant 0 : index
    %8 = vector.load %arg6[%c0_8, %c0_9] : memref<1x32xf32, #tpu.memory_space<vmem>>, vector<1x32xf32>
    %9 = vector.broadcast %8 : vector<1x32xf32> to vector<16x32xf32>
    %10 = arith.addf %7, %9 : vector<16x32xf32>
    %cst_10 = arith.constant 5.000000e-01 : f32
    %11 = vector.broadcast %cst_10 : f32 to vector<16x32xf32>
    %12 = arith.mulf %11, %10 : vector<16x32xf32>
    %cst_11 = arith.constant 0.707106769 : f32
    %13 = vector.broadcast %cst_11 : f32 to vector<16x32xf32>
    %14 = arith.mulf %10, %13 : vector<16x32xf32>
    %15 = math.erf %14 : vector<16x32xf32>
    %cst_12 = arith.constant 1.000000e+00 : f32
    %16 = vector.broadcast %cst_12 : f32 to vector<16x32xf32>
    %17 = arith.addf %16, %15 : vector<16x32xf32>
    %18 = arith.mulf %12, %17 : vector<16x32xf32>
    %19 = arith.mulf %5, %18 : vector<16x32xf32>
    %c0_13 = arith.constant 0 : index
    %c0_14 = arith.constant 0 : index
    %20 = vector.load %arg7[%c0_13, %c0_14] : memref<16x32xf32, #tpu.memory_space<vmem>>, vector<16x32xf32>
    tpu.vector_store %arg7[%c0_13, %c0_14], %19 {strides = array<i32>} : memref<16x32xf32, #tpu.memory_space<vmem>>, vector<16x32xf32>,
    return
  }
  func.func @transform_0(%arg0: i32, %arg1: i32) -> (i32, i32) {
    %c0_i32 = arith.constant 0 : i32
    %c0_i32_0 = arith.constant 0 : i32
    return %arg1, %c0_i32 : i32, i32
  }
  func.func @transform_1(%arg0: i32, %arg1: i32) -> (i32, i32) {
    %c0_i32 = arith.constant 0 : i32
    %c0_i32_0 = arith.constant 0 : i32
    return %c0_i32, %arg0 : i32, i32
  }
  func.func @transform_2(%arg0: i32, %arg1: i32) -> (i32, i32) {
    %c0_i32 = arith.constant 0 : i32
    %c0_i32_0 = arith.constant 0 : i32
    return %c0_i32, %arg0 : i32, i32
  }
  func.func @transform_3(%arg0: i32, %arg1: i32) -> (i32, i32) {
    %c0_i32 = arith.constant 0 : i32
    %c0_i32_0 = arith.constant 0 : i32
    return %c0_i32, %arg0 : i32, i32
  }
  func.func @transform_4(%arg0: i32, %arg1: i32) -> (i32, i32) {
    %c0_i32 = arith.constant 0 : i32
    %c0_i32_0 = arith.constant 0 : i32
    return %c0_i32, %arg0 : i32, i32
  }
  func.func @transform_5(%arg0: i32, %arg1: i32) -> (i32, i32) {
    %c0_i32 = arith.constant 0 : i32
    return %arg1, %arg0 : i32, i32
  }
}

</mosaic_0001>

<bundles_post_ra>
// kernel: tpu_custom_call.1
= control target key start
LH: loop header
LB: loop body
LE: loop exit
PB: predicated region body
PF: predicated region fallthrough
CT: control target
= control target key end

     0   :  { %10 = vsyncpa [#allocation3], 0  ;;  %s550_s0 = inlined_call_operand.hbm [shape: f32[16,32], index: 0, kind: input, shape index: {}]   ;;  %s551_s1 = inlined_call_operand.hbm [shape: f32[32,32], index: 1, kind: input, shape index: {}]   ;;  %s552_s2 = inlined_call_operand.hbm [shape: f32[32,32], index: 2, kind: input, shape index: {}]   ;;  %s553_s3 = inlined_call_operand.vmem [shape: f32[1,32], index: 3, kind: input, shape index: {}]   ;;  %s554_s4 = inlined_call_operand.vmem [shape: f32[1,32], index: 4, kind: input, shape index: {}]   ;;  %s555_s5 = inlined_call_operand.hbm [shape: f32[16,32], index: 5, kind: output, shape index: {}]  }
   0x1   :  { %11 = vsyncpa [#allocation6], 0 }
   0x2   :  { %12 = vsyncpa [#allocation4], 0  ;;  %s435_s18 = smov [#allocation5]   ;;  %s436_s20 = smov [#allocation2]  }
   0x3   :  { %s30_s19 = sshll.u32 %s435_s18, 4  ;;  %s18_s21 = sshll.u32 %s436_s20, 4  ;;  %s31_s19 = int_to_ptr.vmem [resolvable:$true] %s30_s19  ;;  %s471_s21 = int_to_ptr.vmem [resolvable:$true] %s18_s21 }
   0x4   :  { %s341_s24 = scalar_lea.hbm %s551_s1, 512 }
   0x5   :  { %p342_p0 = scmp.ne.s32.totalorder %s551_s1, %s341_s24  ;;  %p345_p1 = scmp.lt.u32.totalorder %s341_s24, %s551_s1 }
   0x7   :  { %p347_p2 = pnand %p345_p1, %p342_p0 }
   0x9   :  { %350 = shalt.err (!%p347_p2)
}
   0xa   :  { %s351_s29 = scalar_lea.vmem %s31_s19, 512  ;;  %p356_p4 = scmp.lt.s32.totalorder %s31_s19, %s31_s19 }
   0xb   :  { %p352_p3 = scmp.ne.s32.totalorder %s31_s19, %s351_s29  ;;  %p357_p5 = scmp.lt.s32.totalorder %s351_s29, %s351_s29 }
   0xd   :  { %p358_p6 = por %p357_p5, %p356_p4 }
   0xf   :  { %p359_p7 = pnand %p358_p6, %p352_p3 }
  0x11   :  { %362 = shalt.err (!%p359_p7)
}
  0x12   :  { %s437_s30 = smov 128   ;;  %s438_s6 = smov 8  }
  0x13   :  { %36 = dma.hbm_to_vmem [thread:$0]  %s551_s1, 512, %s31_s19, [#allocation6], %s437_s30, %s437_s30, %s438_s6  }
  0x14   :  { %s363_s11 = scalar_lea.hbm %s550_s0, 256 }
  0x15   :  { %p364_p8 = scmp.ne.s32.totalorder %s550_s0, %s363_s11  ;;  %p367_p9 = scmp.lt.u32.totalorder %s363_s11, %s550_s0 }
  0x17   :  { %p369_p10 = pnand %p367_p9, %p364_p8 }
  0x19   :  { %372 = shalt.err (!%p369_p10)
}
  0x1a   :  { %s373_s16 = scalar_lea.vmem %s471_s21, 256  ;;  %p378_p12 = scmp.lt.s32.totalorder %s471_s21, %s471_s21 }
  0x1b   :  { %p374_p11 = scmp.ne.s32.totalorder %s471_s21, %s373_s16  ;;  %p379_p13 = scmp.lt.s32.totalorder %s373_s16, %s373_s16 }
  0x1d   :  { %p380_p0 = por %p379_p13, %p378_p12 }
  0x1f   :  { %p381_p1 = pnand %p380_p0, %p374_p11 }
  0x21   :  { %384 = shalt.err (!%p381_p1)
}
  0x22   :  { %24 = dma.hbm_to_vmem [thread:$0]  %s550_s0, 256, %s471_s21, [#allocation3], %s437_s30, %s437_s30, %s438_s6  }
  0x23   :  { %s439_s18 = smov [#allocation7]   ;;  %s385_s23 = scalar_lea.hbm %s552_s2, 512 }
  0x24   :  { %s42_s19 = sshll.u32 %s439_s18, 4  ;;  %p386_p2 = scmp.ne.s32.totalorder %s552_s2, %s385_s23  ;;  %s43_s19 = int_to_ptr.vmem [resolvable:$true] %s42_s19 }
  0x25   :  { %p389_p3 = scmp.lt.u32.totalorder %s385_s23, %s552_s2 }
  0x27   :  { %p391_p4 = pnand %p389_p3, %p386_p2 }
  0x29   :  { %394 = shalt.err (!%p391_p4)
}
  0x2a   :  { %s395_s28 = scalar_lea.vmem %s43_s19, 512  ;;  %p400_p6 = scmp.lt.s32.totalorder %s43_s19, %s43_s19 }
  0x2b   :  { %p396_p5 = scmp.ne.s32.totalorder %s43_s19, %s395_s28  ;;  %p401_p7 = scmp.lt.s32.totalorder %s395_s28, %s395_s28 }
  0x2d   :  { %p402_p8 = por %p401_p7, %p400_p6 }
  0x2f   :  { %p403_p9 = pnand %p402_p8, %p396_p5 }
  0x31   :  { %406 = shalt.err (!%p403_p9)
}
  0x32   :  { %48 = dma.hbm_to_vmem [thread:$0]  %s552_s2, 512, %s43_s19, [#allocation6], %s437_s30, %s437_s30, %s438_s6  }
  0x33   :  { %429 = dma.done.wait [#allocation3], 256  }
  0x34   :  { %430 = vsyncadd [#allocation3], 4294967040 }
  0x35   :  { %431 = dma.done.wait [#allocation6], 1024  }
  0x36   :  { %432 = vsyncadd [#allocation6], 4294966272  ;;  %vm75_vm0 = vcmask 261120   ;;  %v157_v0 = vld [vmem:[#allocation7] sm:$0xff]  ;;  %v158_v1 = vld [vmem:[#allocation7 + $0x8] sm:$0xff] }
  0x37   :  { %v159_v2 = vld [vmem:[#allocation7 + $0x10] sm:$0xff]  ;;  %v323_v3 = vpack.c.bf16 %v158_v1, %v157_v0  ;;  %v160_v4 = vld [vmem:[#allocation7 + $0x18] sm:$0xff]  ;;  %v64_v7 = vld [vmem:[#allocation5] sm:$0xff] }
  0x38   :  { %v62_v5 = vld [vmem:[#allocation2] sm:$0xff]  ;;  %v327_v6 = vpack.c.bf16 %v160_v4, %v159_v2  ;;  %v65_v8 = vld [vmem:[#allocation5 + $0x8] sm:$0xff]  ;;  %v67_v11 = vld [vmem:[#allocation5 + $0x18] sm:$0xff] }
  0x39   :  { %312 = vmatprep.mubr.msk.f32.mxu1 %vm75_vm0, %v62_v5  ;;  %v66_v9 = vld [vmem:[#allocation5 + $0x10] sm:$0xff]  ;;  %301 = vmatprep.mubr.msk.f32.mxu0 %vm75_vm0, %v62_v5  ;;  %v315_v10 = vpack.c.bf16 %v65_v8, %v64_v7  ;;  %v63_v13 = vld [vmem:[#allocation2 + $0x8] sm:$0xff] }
  0x3a   :  { %324 = vmatprep.subr.bf16.mxu1 %v323_v3  ;;  %v319_v12 = vpack.c.bf16 %v67_v11, %v66_v9  ;;  %v278_v14 = vld [vmem:[%s554_s4] ss:$0 sm:$0xff]  ;;  %s440_s4 = smov [#allocation8]  }
  0x3b   :  { %326 = vmatpush3.bf16.msra.mxu1 %v323_v3  ;;  %316 = vmatprep.subr.bf16.mxu0 %v315_v10  ;;  %v275_v23 = vld [vmem:[%s553_s3] ss:$0 sm:$0xff]  ;;  %s262_s9 = sshll.u32 %s440_s4, 4  ;;  %s263_s9 = int_to_ptr.vmem [resolvable:$true] %s262_s9 }
  0x3c   :  { %328 = vmatprep.subr.bf16.mxu1 %v327_v6  ;;  %318 = vmatpush3.bf16.msra.mxu0 %v315_v10  ;;  %s407_s3 = scalar_lea.vmem %s263_s9, 256  ;;  %p412_p11 = scmp.lt.s32.totalorder %s263_s9, %s263_s9 }
  0x3d   :  { %320 = vmatprep.subr.bf16.mxu0 %v319_v12  ;;  %p408_p10 = scmp.ne.s32.totalorder %s263_s9, %s407_s3  ;;  %p413_p12 = scmp.lt.s32.totalorder %s407_s3, %s407_s3 }
  0x3f   :  { %330 = vmatpush3.bf16.msra.mxu1 %v327_v6  ;;  %p414_p13 = por %p413_p12, %p412_p11 }
  0x40   :  { %322 = vmatpush3.bf16.msra.mxu0 %v319_v12 }
  0x41   :  { %p415_p0 = pnand %p414_p13, %p408_p10 }
  0x42   :  { %313 = vmatmul.mubr.msk.f32.vlgmr.msra.gmra.mrb[0].mxu1 %vm75_vm0, %v63_v13 }
  0x43   :  { %302 = vmatmul.mubr.msk.f32.vlgmr.msra.gmra.mrb[0].mxu0 %vm75_vm0, %v63_v13 }
 0x115   :  { %v314_v15 = vpop.f32.mrb[0].mxu1 }
 0x116   :  { %v240_v16 = vadd.f32 %v314_v15, %v278_v14  ;;  %v234_v17 = vpop.f32.mrb[1].mxu1  ;;  %v303_v19 = vpop.f32.mrb[0].mxu0 }
 0x117   :  { %v235_v18 = vadd.f32 %v278_v14, %v234_v17  ;;  %v148_v21 = vpop.f32.mrb[1].mxu0  ;;  %v154_v28 = vadd.f32 %v303_v19, %v275_v23 }
 0x118   :  { %v246_v20 = vmul.f32 0.70710677, %v240_v16  ;;  %v244_v26 = vmul.f32 0.5, %v240_v16  ;;  %v149_v31 = vadd.f32 %v275_v23, %v148_v21 }
 0x119   :  { %v245_v22 = vmul.f32 0.70710677, %v235_v18  ;;  %v243_v29 = vmul.f32 0.5, %v235_v18 }
 0x11a   :  { %337 = verf.f32 %v246_v20 }
 0x11b   :  { %339 = verf.f32 %v245_v22 }
 0x124   :  { %v338_v24 = vpop.eup %337 }
 0x125   :  { %v340_v25 = vpop.eup %339  ;;  %v250_v27 = vadd.f32 1.0, %v338_v24 }
 0x126   :  { %v249_v30 = vadd.f32 1.0, %v340_v25 }
 0x127   :  { %v252_v32 = vmul.f32 %v250_v27, %v244_v26 }
 0x128   :  { %v251_v33 = vmul.f32 %v249_v30, %v243_v29 }
 0x129   :  { %v254_v34 = vmul.f32 %v252_v32, %v154_v28 }
 0x12a   :  { %v253_v35 = vmul.f32 %v251_v33, %v149_v31 }
 0x12b   :  { %256 = vst.msk [vmem:[#allocation8 + $0x8] sm:$0xff] %vm75_vm0, %v254_v34 }
 0x12c   :  { %255 = vst.msk [vmem:[#allocation8] sm:$0xff] %vm75_vm0, %v253_v35 }
 0x12d   :  { %418 = shalt.err (!%p415_p0)
}
 0x12e   :  { %s419_s12 = scalar_lea.hbm %s555_s5, 256 }
 0x12f   :  { %p420_p1 = scmp.ne.s32.totalorder %s555_s5, %s419_s12  ;;  %p423_p2 = scmp.lt.u32.totalorder %s419_s12, %s555_s5 }
 0x131   :  { %p425_p3 = pnand %p423_p2, %p420_p1 }
 0x133   :  { %428 = shalt.err (!%p425_p3)
}
 0x134   :  { %268 = dma.vmem_to_hbm [thread:$0]  %s263_s9, 256, %s555_s5, [#allocation4], %s437_s30, %s437_s30, %s438_s6  }
 0x135   :  { %433 = dma.done.wait [#allocation4], 256  }
 0x136   :  { %434 = vsyncadd [#allocation4], 4294967040 }
 0x137   :  { %272 = vsyncpa [#allocation3], 1 }
 0x138   :  { %273 = vsyncpa [#allocation6], 1 }
 0x139   :  { %274 = vsyncpa [#allocation4], 1 }

</bundles_post_ra>
